<compile_context>
chip_gen: v5e
topology: v5e:2x2
jax: 0.10.0
libtpu: 0.0.40
codegen_flags: <defaults>
</compile_context>

<pallas_src>
import functools
import math

import jax
import jax.numpy as jnp
from jax.experimental import pallas as pl
from jax.experimental.pallas import tpu as pltpu


# ----------------------------------------------------------------------------
# Fused encoder-layer kernel
# ----------------------------------------------------------------------------
def _layernorm(x, gamma, beta, eps=1e-5):
    mean = jnp.mean(x, axis=-1, keepdims=True)
    c = x - mean
    var = jnp.mean(c * c, axis=-1, keepdims=True)
    return c * jax.lax.rsqrt(var + eps) * gamma + beta


def _encoder_layer_kernel(x_ref, wqkv_ref, wo_ref, w1_ref, w2_ref, vec_ref,
                          o_ref, *, bb, S, h, d_k, d_v, d_model, d_ff):
    """Whole encoder layer for a block of `bb` batch items (bb*S rows)."""
    x = x_ref[...]                                    # (bb*S, d_model) f32
    vec = vec_ref[...]                                # (8, VW) packed vectors
    bqkv = vec[0:1, : h * (2 * d_k + d_v)]
    bo   = vec[1:2, : d_model]
    b1   = vec[2:3, : d_ff]
    b2   = vec[3:4, : d_model]
    g1   = vec[4:5, : d_model]
    be1  = vec[5:6, : d_model]
    g2   = vec[6:7, : d_model]
    be2  = vec[7:8, : d_model]

    # ---- multi-head self-attention (all heads, all rows of this block) ----
    qkv = jnp.dot(x, wqkv_ref[...], preferred_element_type=jnp.float32) + bqkv
    q_all = qkv[:, : h * d_k]
    k_all = qkv[:, h * d_k: 2 * h * d_k]
    v_all = qkv[:, 2 * h * d_k:]
    wo = wo_ref[...]                                  # (h*d_v, d_model)
    scale = 1.0 / math.sqrt(d_k)

    attn = jnp.zeros((bb * S, d_model), jnp.float32)
    for hh in range(h):                               # unrolled at trace time
        q = q_all[:, hh * d_k:(hh + 1) * d_k].reshape(bb, S, d_k)
        k = k_all[:, hh * d_k:(hh + 1) * d_k].reshape(bb, S, d_k)
        v = v_all[:, hh * d_v:(hh + 1) * d_v].reshape(bb, S, d_v)
        s = jnp.einsum('bqd,bkd->bqk', q, k,
                       preferred_element_type=jnp.float32) * scale
        s = s - jnp.max(s, axis=-1, keepdims=True)
        e = jnp.exp(s)
        p = e * pl.reciprocal(jnp.sum(e, axis=-1, keepdims=True), approx=True)
        o_h = jnp.einsum('bqk,bkd->bqd', p, v,
                         preferred_element_type=jnp.float32)
        # fold output projection per head (avoids head-concat / transpose glue)
        attn = attn + jnp.dot(o_h.reshape(bb * S, d_v),
                              wo[hh * d_v:(hh + 1) * d_v, :],
                              preferred_element_type=jnp.float32)
    attn = attn + bo

    # ---- residual + LayerNorm 1 (dropout == identity) ----
    x1 = _layernorm(attn + x, g1, be1)

    # ---- feed-forward: Linear -> ReLU -> Linear ----
    hdn = jnp.maximum(
        jnp.dot(x1, w1_ref[...], preferred_element_type=jnp.float32) + b1, 0.0)
    f = jnp.dot(hdn, w2_ref[...], preferred_element_type=jnp.float32) + b2

    # ---- residual + LayerNorm 2 (dropout == identity) ----
    o_ref[...] = _layernorm(f + x1, g2, be2)


def transformer_encoder_forward(params, x, *, batch_block=None):
    """x: (B, S, d_model) float32 -> (B, S, d_model) float32."""
    B, S, D = x.shape
    h, d_k, d_v, d_ff = params["h"], params["d_k"], params["d_v"], params["d_ff"]
    bb = B if batch_block is None else batch_block
    assert B % bb == 0, "batch_block must divide batch"
    nb = B // bb

    wqkv, wo = params["wqkv"], params["wo"]
    w1, w2, vec = params["w1"], params["w2"], params["vec"]
    x2d = x.reshape(B * S, D)

    kern = functools.partial(_encoder_layer_kernel, bb=bb, S=S, h=h,
                             d_k=d_k, d_v=d_v, d_model=D, d_ff=d_ff)
    out2d = pl.pallas_call(
        kern,
        out_shape=jax.ShapeDtypeStruct((B * S, D), jnp.float32),
        grid=(nb,),
        in_specs=[
            pl.BlockSpec((bb * S, D), lambda i: (i, 0)),      # activations: tiled over batch
            pl.BlockSpec(wqkv.shape, lambda i: (0, 0)),       # weights: VMEM-resident
            pl.BlockSpec(wo.shape, lambda i: (0, 0)),
            pl.BlockSpec(w1.shape, lambda i: (0, 0)),
            pl.BlockSpec(w2.shape, lambda i: (0, 0)),
            pl.BlockSpec(vec.shape, lambda i: (0, 0)),        # packed biases / LN params
        ],
        out_specs=pl.BlockSpec((bb * S, D), lambda i: (i, 0)),
        compiler_params=pltpu.CompilerParams(
            dimension_semantics=("parallel",)),               # v7x dual-TC sharding
    )(x2d, wqkv, wo, w1, w2, vec)
    return out2d.reshape(B, S, D)


# ----------------------------------------------------------------------------
# Deterministic parameter init (packed layout consumed by the fused kernel)
# ----------------------------------------------------------------------------
def init_params(key, d_model, d_k, d_v, h, d_ff):
    ks = jax.random.split(key, 6)

    def w(k, shape):
        return jax.random.normal(k, shape, jnp.float32) * 0.02

    wq = w(ks[0], (d_model, h * d_k))
    wk = w(ks[1], (d_model, h * d_k))
    wv = w(ks[2], (d_model, h * d_v))
    wqkv = jnp.concatenate([wq, wk, wv], axis=1)          # (d_model, h*(2dk+dv))
    wo = w(ks[3], (h * d_v, d_model))
    w1 = w(ks[4], (d_model, d_ff))
    w2 = w(ks[5], (d_ff, d_model))

    bqkv = jnp.zeros((h * (2 * d_k + d_v),), jnp.float32)
    bo = jnp.zeros((d_model,), jnp.float32)
    b1 = jnp.zeros((d_ff,), jnp.float32)
    b2 = jnp.zeros((d_model,), jnp.float32)
    ln1_g = jnp.ones((d_model,), jnp.float32)
    ln1_b = jnp.zeros((d_model,), jnp.float32)
    ln2_g = jnp.ones((d_model,), jnp.float32)
    ln2_b = jnp.zeros((d_model,), jnp.float32)

    vw = max(h * (2 * d_k + d_v), d_ff, d_model)

    def row(v):
        return jnp.pad(v, (0, vw - v.shape[0])).reshape(1, vw)

    vec = jnp.concatenate(
        [row(bqkv), row(bo), row(b1), row(b2),
         row(ln1_g), row(ln1_b), row(ln2_g), row(ln2_b)], axis=0)   # (8, vw)

    return dict(h=h, d_k=d_k, d_v=d_v, d_ff=d_ff,
                wqkv=wqkv, wo=wo, w1=w1, w2=w2, vec=vec)


# ----------------------------------------------------------------------------
# Pure-JAX reference (same math, exact softmax) for a sanity check
# ----------------------------------------------------------------------------
def reference_forward(params, x):
    B, S, D = x.shape
    h, d_k, d_v, d_ff = params["h"], params["d_k"], params["d_v"], params["d_ff"]
    wqkv, wo = params["wqkv"], params["wo"]
    w1, w2, vec = params["w1"], params["w2"], params["vec"]
    bqkv = vec[0, : h * (2 * d_k + d_v)]
    bo, b1, b2 = vec[1, :D], vec[2, :d_ff], vec[3, :D]
    g1, be1, g2, be2 = vec[4, :D], vec[5, :D], vec[6, :D], vec[7, :D]

    x2 = x.reshape(B * S, D)
    qkv = x2 @ wqkv + bqkv
    q = qkv[:, : h * d_k].reshape(B, S, h, d_k).transpose(0, 2, 1, 3)
    k = qkv[:, h * d_k: 2 * h * d_k].reshape(B, S, h, d_k).transpose(0, 2, 1, 3)
    v = qkv[:, 2 * h * d_k:].reshape(B, S, h, d_v).transpose(0, 2, 1, 3)
    s = jnp.einsum('bhqd,bhkd->bhqk', q, k) / math.sqrt(d_k)
    p = jax.nn.softmax(s, axis=-1)
    o = jnp.einsum('bhqk,bhkd->bhqd', p, v).transpose(0, 2, 1, 3)
    attn = o.reshape(B * S, h * d_v) @ wo + bo

    def ln(y, g, b):
        m = y.mean(-1, keepdims=True)
        c = y - m
        return c * jax.lax.rsqrt((c * c).mean(-1, keepdims=True) + 1e-5) * g + b

    x1 = ln(attn + x2, g1, be1)
    f = jnp.maximum(x1 @ w1 + b1, 0.0) @ w2 + b2
    return ln(f + x1, g2, be2).reshape(B, S, D)


# ----------------------------------------------------------------------------
if __name__ == "__main__":
    # Small config consistent with TransformerEncoder(d_model, d_k, d_v, h, d_ff)
    d_model, d_k, d_v, h, d_ff = 32, 8, 8, 4, 64
    batch, seq = 2, 8

    root = jax.random.PRNGKey(0)
    k_params, k_x = jax.random.split(root)
    params = init_params(k_params, d_model, d_k, d_v, h, d_ff)
    x = jax.random.normal(k_x, (batch, seq, d_model), jnp.float32)

    out = transformer_encoder_forward(params, x)
    out = jax.block_until_ready(out)

    assert out.shape == (batch, seq, d_model)
    assert bool(jnp.all(jnp.isfinite(out)))
    ref = reference_forward(params, x)
    assert bool(jnp.allclose(out, ref, atol=3e-2, rtol=3e-2)), \
        float(jnp.max(jnp.abs(out - ref)))
    print("KERNEL_OK")
</pallas_src>

<mosaic_0001>
module attributes {stable_mosaic.version = 11 : i64} {
  func.func @_encoder_layer_kernel(%arg0: i32, %arg1: memref<16x32xf32, #tpu.memory_space<vmem>>, %arg2: memref<32x96xf32, #tpu.memory_space<vmem>>, %arg3: memref<32x32xf32, #tpu.memory_space<vmem>>, %arg4: memref<32x64xf32, #tpu.memory_space<vmem>>, %arg5: memref<64x32xf32, #tpu.memory_space<vmem>>, %arg6: memref<8x96xf32, #tpu.memory_space<vmem>>, %arg7: memref<16x32xf32, #tpu.memory_space<vmem>>) attributes {dimension_semantics = [#tpu.dimension_semantics<parallel>], iteration_bounds = array<i64: 1>, scalar_prefetch = 0 : i64, scratch_operands = 0 : i64, tpu.core_type = #tpu.core_type<tc>, window_params = [{transform_indices = @transform_0, window_bounds = array<i64: 16, 32>}, {pipeline_mode = #tpu.pipeline_mode<synchronous>, transform_indices = @transform_1, window_bounds = array<i64: 32, 96>}, {pipeline_mode = #tpu.pipeline_mode<synchronous>, transform_indices = @transform_2, window_bounds = array<i64: 32, 32>}, {pipeline_mode = #tpu.pipeline_mode<synchronous>, transform_indices = @transform_3, window_bounds = array<i64: 32, 64>}, {pipeline_mode = #tpu.pipeline_mode<synchronous>, transform_indices = @transform_4, window_bounds = array<i64: 64, 32>}, {pipeline_mode = #tpu.pipeline_mode<synchronous>, transform_indices = @transform_5, window_bounds = array<i64: 8, 96>}, {transform_indices = @transform_6, window_bounds = array<i64: 16, 32>}]} {
    %c0 = arith.constant 0 : index
    %c0_0 = arith.constant 0 : index
    %0 = vector.load %arg1[%c0, %c0_0] : memref<16x32xf32, #tpu.memory_space<vmem>>, vector<16x32xf32>
    %c0_1 = arith.constant 0 : index
    %c0_2 = arith.constant 0 : index
    %1 = vector.load %arg6[%c0_1, %c0_2] : memref<8x96xf32, #tpu.memory_space<vmem>>, vector<8x96xf32>
    %2 = vector.extract_strided_slice %1 {offsets = [0, 0], sizes = [1, 96], strides = [1, 1]} : vector<8x96xf32> to vector<1x96xf32>
    %3 = vector.extract_strided_slice %1 {offsets = [1, 0], sizes = [1, 32], strides = [1, 1]} : vector<8x96xf32> to vector<1x32xf32>
    %4 = vector.extract_strided_slice %1 {offsets = [2, 0], sizes = [1, 64], strides = [1, 1]} : vector<8x96xf32> to vector<1x64xf32>
    %5 = vector.extract_strided_slice %1 {offsets = [3, 0], sizes = [1, 32], strides = [1, 1]} : vector<8x96xf32> to vector<1x32xf32>
    %6 = vector.extract_strided_slice %1 {offsets = [4, 0], sizes = [1, 32], strides = [1, 1]} : vector<8x96xf32> to vector<1x32xf32>
    %7 = vector.extract_strided_slice %1 {offsets = [5, 0], sizes = [1, 32], strides = [1, 1]} : vector<8x96xf32> to vector<1x32xf32>
    %8 = vector.extract_strided_slice %1 {offsets = [6, 0], sizes = [1, 32], strides = [1, 1]} : vector<8x96xf32> to vector<1x32xf32>
    %9 = vector.extract_strided_slice %1 {offsets = [7, 0], sizes = [1, 32], strides = [1, 1]} : vector<8x96xf32> to vector<1x32xf32>
    %c0_3 = arith.constant 0 : index
    %c0_4 = arith.constant 0 : index
    %10 = vector.load %arg2[%c0_3, %c0_4] : memref<32x96xf32, #tpu.memory_space<vmem>>, vector<32x96xf32>
    %cst = arith.constant dense<0.000000e+00> : vector<16x96xf32>
    %11 = tpu.matmul %0, %10, %cst {dimension_numbers = #tpu.dot_dimension_numbers<[1], [0], [0], [1], [0, 0, 1, 1], [], []>} : vector<16x32xf32>, vector<32x96xf32>, vector<16x96xf32> -> vector<16x96xf32>
    %12 = vector.broadcast %2 : vector<1x96xf32> to vector<16x96xf32>
    %13 = arith.addf %11, %12 : vector<16x96xf32>
    %14 = vector.extract_strided_slice %13 {offsets = [0, 0], sizes = [16, 32], strides = [1, 1]} : vector<16x96xf32> to vector<16x32xf32>
    %15 = vector.extract_strided_slice %13 {offsets = [0, 32], sizes = [16, 32], strides = [1, 1]} : vector<16x96xf32> to vector<16x32xf32>
    %16 = vector.extract_strided_slice %13 {offsets = [0, 64], sizes = [16, 32], strides = [1, 1]} : vector<16x96xf32> to vector<16x32xf32>
    %c0_5 = arith.constant 0 : index
    %c0_6 = arith.constant 0 : index
    %17 = vector.load %arg3[%c0_5, %c0_6] : memref<32x32xf32, #tpu.memory_space<vmem>>, vector<32x32xf32>
    %cst_7 = arith.constant 0.000000e+00 : f32
    %18 = vector.broadcast %cst_7 : f32 to vector<16x32xf32>
    %19 = vector.extract_strided_slice %14 {offsets = [0, 0], sizes = [16, 8], strides = [1, 1]} : vector<16x32xf32> to vector<16x8xf32>
    %20 = vector.shape_cast %19 : vector<16x8xf32> to vector<2x8x8xf32>
    %21 = vector.extract_strided_slice %15 {offsets = [0, 0], sizes = [16, 8], strides = [1, 1]} : vector<16x32xf32> to vector<16x8xf32>
    %22 = vector.shape_cast %21 : vector<16x8xf32> to vector<2x8x8xf32>
    %23 = vector.extract_strided_slice %16 {offsets = [0, 0], sizes = [16, 8], strides = [1, 1]} : vector<16x32xf32> to vector<16x8xf32>
    %24 = vector.shape_cast %23 : vector<16x8xf32> to vector<2x8x8xf32>
    "tpu.trace_start"() <{level = 10 : i32, message = "bqd,bkd->bqk"}> : () -> ()
    %cst_8 = arith.constant dense<0.000000e+00> : vector<2x8x8xf32>
    %25 = tpu.matmul %20, %22, %cst_8 {dimension_numbers = #tpu.dot_dimension_numbers<[2], [2], [1], [1], [0, 0, 0, 1, 1, 1], [0], [0]>} : vector<2x8x8xf32>, vector<2x8x8xf32>, vector<2x8x8xf32> -> vector<2x8x8xf32>
    "tpu.trace_stop"() : () -> ()
    %cst_9 = arith.constant 0.353553385 : f32
    %26 = vector.broadcast %cst_9 : f32 to vector<2x8x8xf32>
    %27 = arith.mulf %25, %26 : vector<2x8x8xf32>
    %cst_10 = arith.constant dense<0xFF800000> : vector<2x8xf32>
    %28 = vector.multi_reduction <maximumf>, %27, %cst_10 [2] : vector<2x8x8xf32> to vector<2x8xf32>
    %29 = vector.shape_cast %28 : vector<2x8xf32> to vector<2x8x1xf32>
    %30 = vector.broadcast %29 : vector<2x8x1xf32> to vector<2x8x8xf32>
    %31 = arith.subf %27, %30 : vector<2x8x8xf32>
    %32 = math.exp %31 : vector<2x8x8xf32>
    %cst_11 = arith.constant dense<0.000000e+00> : vector<2x8xf32>
    %33 = vector.multi_reduction <add>, %32, %cst_11 [2] : vector<2x8x8xf32> to vector<2x8xf32>
    %34 = vector.shape_cast %33 : vector<2x8xf32> to vector<2x8x1xf32>
    %35 = tpu.reciprocal %34 {approx = true} : vector<2x8x1xf32> -> vector<2x8x1xf32>
    %36 = vector.broadcast %35 : vector<2x8x1xf32> to vector<2x8x8xf32>
    %37 = arith.mulf %32, %36 : vector<2x8x8xf32>
    "tpu.trace_start"() <{level = 10 : i32, message = "bqk,bkd->bqd"}> : () -> ()
    %cst_12 = arith.constant dense<0.000000e+00> : vector<2x8x8xf32>
    %38 = tpu.matmul %37, %24, %cst_12 {dimension_numbers = #tpu.dot_dimension_numbers<[2], [1], [1], [2], [0, 0, 0, 1, 1, 2], [0], [0]>} : vector<2x8x8xf32>, vector<2x8x8xf32>, vector<2x8x8xf32> -> vector<2x8x8xf32>
    "tpu.trace_stop"() : () -> ()
    %39 = vector.shape_cast %38 : vector<2x8x8xf32> to vector<16x8xf32>
    %40 = vector.extract_strided_slice %17 {offsets = [0, 0], sizes = [8, 32], strides = [1, 1]} : vector<32x32xf32> to vector<8x32xf32>
    %cst_13 = arith.constant dense<0.000000e+00> : vector<16x32xf32>
    %41 = tpu.matmul %39, %40, %cst_13 {dimension_numbers = #tpu.dot_dimension_numbers<[1], [0], [0], [1], [0, 0, 1, 1], [], []>} : vector<16x8xf32>, vector<8x32xf32>, vector<16x32xf32> -> vector<16x32xf32>
    %42 = arith.addf %18, %41 : vector<16x32xf32>
    %43 = vector.extract_strided_slice %14 {offsets = [0, 8], sizes = [16, 8], strides = [1, 1]} : vector<16x32xf32> to vector<16x8xf32>
    %44 = vector.shape_cast %43 : vector<16x8xf32> to vector<2x8x8xf32>
    %45 = vector.extract_strided_slice %15 {offsets = [0, 8], sizes = [16, 8], strides = [1, 1]} : vector<16x32xf32> to vector<16x8xf32>
    %46 = vector.shape_cast %45 : vector<16x8xf32> to vector<2x8x8xf32>
    %47 = vector.extract_strided_slice %16 {offsets = [0, 8], sizes = [16, 8], strides = [1, 1]} : vector<16x32xf32> to vector<16x8xf32>
    %48 = vector.shape_cast %47 : vector<16x8xf32> to vector<2x8x8xf32>
    "tpu.trace_start"() <{level = 10 : i32, message = "bqd,bkd->bqk"}> : () -> ()
    %cst_14 = arith.constant dense<0.000000e+00> : vector<2x8x8xf32>
    %49 = tpu.matmul %44, %46, %cst_14 {dimension_numbers = #tpu.dot_dimension_numbers<[2], [2], [1], [1], [0, 0, 0, 1, 1, 1], [0], [0]>} : vector<2x8x8xf32>, vector<2x8x8xf32>, vector<2x8x8xf32> -> vector<2x8x8xf32>
    "tpu.trace_stop"() : () -> ()
    %cst_15 = arith.constant 0.353553385 : f32
    %50 = vector.broadcast %cst_15 : f32 to vector<2x8x8xf32>
    %51 = arith.mulf %49, %50 : vector<2x8x8xf32>
    %cst_16 = arith.constant dense<0xFF800000> : vector<2x8xf32>
    %52 = vector.multi_reduction <maximumf>, %51, %cst_16 [2] : vector<2x8x8xf32> to vector<2x8xf32>
    %53 = vector.shape_cast %52 : vector<2x8xf32> to vector<2x8x1xf32>
    %54 = vector.broadcast %53 : vector<2x8x1xf32> to vector<2x8x8xf32>
    %55 = arith.subf %51, %54 : vector<2x8x8xf32>
    %56 = math.exp %55 : vector<2x8x8xf32>
    %cst_17 = arith.constant dense<0.000000e+00> : vector<2x8xf32>
    %57 = vector.multi_reduction <add>, %56, %cst_17 [2] : vector<2x8x8xf32> to vector<2x8xf32>
    %58 = vector.shape_cast %57 : vector<2x8xf32> to vector<2x8x1xf32>
    %59 = tpu.reciprocal %58 {approx = true} : vector<2x8x1xf32> -> vector<2x8x1xf32>
    %60 = vector.broadcast %59 : vector<2x8x1xf32> to vector<2x8x8xf32>
    %61 = arith.mulf %56, %60 : vector<2x8x8xf32>
    "tpu.trace_start"() <{level = 10 : i32, message = "bqk,bkd->bqd"}> : () -> ()
    %cst_18 = arith.constant dense<0.000000e+00> : vector<2x8x8xf32>
    %62 = tpu.matmul %61, %48, %cst_18 {dimension_numbers = #tpu.dot_dimension_numbers<[2], [1], [1], [2], [0, 0, 0, 1, 1, 2], [0], [0]>} : vector<2x8x8xf32>, vector<2x8x8xf32>, vector<2x8x8xf32> -> vector<2x8x8xf32>
    "tpu.trace_stop"() : () -> ()
    %63 = vector.shape_cast %62 : vector<2x8x8xf32> to vector<16x8xf32>
    %64 = vector.extract_strided_slice %17 {offsets = [8, 0], sizes = [8, 32], strides = [1, 1]} : vector<32x32xf32> to vector<8x32xf32>
    %cst_19 = arith.constant dense<0.000000e+00> : vector<16x32xf32>
    %65 = tpu.matmul %63, %64, %cst_19 {dimension_numbers = #tpu.dot_dimension_numbers<[1], [0], [0], [1], [0, 0, 1, 1], [], []>} : vector<16x8xf32>, vector<8x32xf32>, vector<16x32xf32> -> vector<16x32xf32>
    %66 = arith.addf %42, %65 : vector<16x32xf32>
    %67 = vector.extract_strided_slice %14 {offsets = [0, 16], sizes = [16, 8], strides = [1, 1]} : vector<16x32xf32> to vector<16x8xf32>
    %68 = vector.shape_cast %67 : vector<16x8xf32> to vector<2x8x8xf32>
    %69 = vector.extract_strided_slice %15 {offsets = [0, 16], sizes = [16, 8], strides = [1, 1]} : vector<16x32xf32> to vector<16x8xf32>
    %70 = vector.shape_cast %69 : vector<16x8xf32> to vector<2x8x8xf32>
    %71 = vector.extract_strided_slice %16 {offsets = [0, 16], sizes = [16, 8], strides = [1, 1]} : vector<16x32xf32> to vector<16x8xf32>
    %72 = vector.shape_cast %71 : vector<16x8xf32> to vector<2x8x8xf32>
    "tpu.trace_start"() <{level = 10 : i32, message = "bqd,bkd->bqk"}> : () -> ()
    %cst_20 = arith.constant dense<0.000000e+00> : vector<2x8x8xf32>
    %73 = tpu.matmul %68, %70, %cst_20 {dimension_numbers = #tpu.dot_dimension_numbers<[2], [2], [1], [1], [0, 0, 0, 1, 1, 1], [0], [0]>} : vector<2x8x8xf32>, vector<2x8x8xf32>, vector<2x8x8xf32> -> vector<2x8x8xf32>
    "tpu.trace_stop"() : () -> ()
    %cst_21 = arith.constant 0.353553385 : f32
    %74 = vector.broadcast %cst_21 : f32 to vector<2x8x8xf32>
    %75 = arith.mulf %73, %74 : vector<2x8x8xf32>
    %cst_22 = arith.constant dense<0xFF800000> : vector<2x8xf32>
    %76 = vector.multi_reduction <maximumf>, %75, %cst_22 [2] : vector<2x8x8xf32> to vector<2x8xf32>
    %77 = vector.shape_cast %76 : vector<2x8xf32> to vector<2x8x1xf32>
    %78 = vector.broadcast %77 : vector<2x8x1xf32> to vector<2x8x8xf32>
    %79 = arith.subf %75, %78 : vector<2x8x8xf32>
    %80 = math.exp %79 : vector<2x8x8xf32>
    %cst_23 = arith.constant dense<0.000000e+00> : vector<2x8xf32>
    %81 = vector.multi_reduction <add>, %80, %cst_23 [2] : vector<2x8x8xf32> to vector<2x8xf32>
    %82 = vector.shape_cast %81 : vector<2x8xf32> to vector<2x8x1xf32>
    %83 = tpu.reciprocal %82 {approx = true} : vector<2x8x1xf32> -> vector<2x8x1xf32>
    %84 = vector.broadcast %83 : vector<2x8x1xf32> to vector<2x8x8xf32>
    %85 = arith.mulf %80, %84 : vector<2x8x8xf32>
    "tpu.trace_start"() <{level = 10 : i32, message = "bqk,bkd->bqd"}> : () -> ()
    %cst_24 = arith.constant dense<0.000000e+00> : vector<2x8x8xf32>
    %86 = tpu.matmul %85, %72, %cst_24 {dimension_numbers = #tpu.dot_dimension_numbers<[2], [1], [1], [2], [0, 0, 0, 1, 1, 2], [0], [0]>} : vector<2x8x8xf32>, vector<2x8x8xf32>, vector<2x8x8xf32> -> vector<2x8x8xf32>
    "tpu.trace_stop"() : () -> ()
    %87 = vector.shape_cast %86 : vector<2x8x8xf32> to vector<16x8xf32>
    %88 = vector.extract_strided_slice %17 {offsets = [16, 0], sizes = [8, 32], strides = [1, 1]} : vector<32x32xf32> to vector<8x32xf32>
    %cst_25 = arith.constant dense<0.000000e+00> : vector<16x32xf32>
    %89 = tpu.matmul %87, %88, %cst_25 {dimension_numbers = #tpu.dot_dimension_numbers<[1], [0], [0], [1], [0, 0, 1, 1], [], []>} : vector<16x8xf32>, vector<8x32xf32>, vector<16x32xf32> -> vector<16x32xf32>
    %90 = arith.addf %66, %89 : vector<16x32xf32>
    %91 = vector.extract_strided_slice %14 {offsets = [0, 24], sizes = [16, 8], strides = [1, 1]} : vector<16x32xf32> to vector<16x8xf32>
    %92 = vector.shape_cast %91 : vector<16x8xf32> to vector<2x8x8xf32>
    %93 = vector.extract_strided_slice %15 {offsets = [0, 24], sizes = [16, 8], strides = [1, 1]} : vector<16x32xf32> to vector<16x8xf32>
    %94 = vector.shape_cast %93 : vector<16x8xf32> to vector<2x8x8xf32>
    %95 = vector.extract_strided_slice %16 {offsets = [0, 24], sizes = [16, 8], strides = [1, 1]} : vector<16x32xf32> to vector<16x8xf32>
    %96 = vector.shape_cast %95 : vector<16x8xf32> to vector<2x8x8xf32>
    "tpu.trace_start"() <{level = 10 : i32, message = "bqd,bkd->bqk"}> : () -> ()
    %cst_26 = arith.constant dense<0.000000e+00> : vector<2x8x8xf32>
    %97 = tpu.matmul %92, %94, %cst_26 {dimension_numbers = #tpu.dot_dimension_numbers<[2], [2], [1], [1], [0, 0, 0, 1, 1, 1], [0], [0]>} : vector<2x8x8xf32>, vector<2x8x8xf32>, vector<2x8x8xf32> -> vector<2x8x8xf32>
    "tpu.trace_stop"() : () -> ()
    %cst_27 = arith.constant 0.353553385 : f32
    %98 = vector.broadcast %cst_27 : f32 to vector<2x8x8xf32>
    %99 = arith.mulf %97, %98 : vector<2x8x8xf32>
    %cst_28 = arith.constant dense<0xFF800000> : vector<2x8xf32>
    %100 = vector.multi_reduction <maximumf>, %99, %cst_28 [2] : vector<2x8x8xf32> to vector<2x8xf32>
    %101 = vector.shape_cast %100 : vector<2x8xf32> to vector<2x8x1xf32>
    %102 = vector.broadcast %101 : vector<2x8x1xf32> to vector<2x8x8xf32>
    %103 = arith.subf %99, %102 : vector<2x8x8xf32>
    %104 = math.exp %103 : vector<2x8x8xf32>
    %cst_29 = arith.constant dense<0.000000e+00> : vector<2x8xf32>
    %105 = vector.multi_reduction <add>, %104, %cst_29 [2] : vector<2x8x8xf32> to vector<2x8xf32>
    %106 = vector.shape_cast %105 : vector<2x8xf32> to vector<2x8x1xf32>
    %107 = tpu.reciprocal %106 {approx = true} : vector<2x8x1xf32> -> vector<2x8x1xf32>
    %108 = vector.broadcast %107 : vector<2x8x1xf32> to vector<2x8x8xf32>
    %109 = arith.mulf %104, %108 : vector<2x8x8xf32>
    "tpu.trace_start"() <{level = 10 : i32, message = "bqk,bkd->bqd"}> : () -> ()
    %cst_30 = arith.constant dense<0.000000e+00> : vector<2x8x8xf32>
    %110 = tpu.matmul %109, %96, %cst_30 {dimension_numbers = #tpu.dot_dimension_numbers<[2], [1], [1], [2], [0, 0, 0, 1, 1, 2], [0], [0]>} : vector<2x8x8xf32>, vector<2x8x8xf32>, vector<2x8x8xf32> -> vector<2x8x8xf32>
    "tpu.trace_stop"() : () -> ()
    %111 = vector.shape_cast %110 : vector<2x8x8xf32> to vector<16x8xf32>
    %112 = vector.extract_strided_slice %17 {offsets = [24, 0], sizes = [8, 32], strides = [1, 1]} : vector<32x32xf32> to vector<8x32xf32>
    %cst_31 = arith.constant dense<0.000000e+00> : vector<16x32xf32>
    %113 = tpu.matmul %111, %112, %cst_31 {dimension_numbers = #tpu.dot_dimension_numbers<[1], [0], [0], [1], [0, 0, 1, 1], [], []>} : vector<16x8xf32>, vector<8x32xf32>, vector<16x32xf32> -> vector<16x32xf32>
    %114 = arith.addf %90, %113 : vector<16x32xf32>
    %115 = vector.broadcast %3 : vector<1x32xf32> to vector<16x32xf32>
    %116 = arith.addf %114, %115 : vector<16x32xf32>
    %117 = arith.addf %116, %0 : vector<16x32xf32>
    %cst_32 = arith.constant dense<0.000000e+00> : vector<16xf32>
    %118 = vector.multi_reduction <add>, %117, %cst_32 [1] : vector<16x32xf32> to vector<16xf32>
    %119 = vector.shape_cast %118 : vector<16xf32> to vector<16x1xf32>
    %cst_33 = arith.constant 3.200000e+01 : f32
    %120 = vector.broadcast %cst_33 : f32 to vector<16x1xf32>
    %121 = arith.divf %119, %120 : vector<16x1xf32>
    %122 = vector.broadcast %121 : vector<16x1xf32> to vector<16x32xf32>
    %123 = arith.subf %117, %122 : vector<16x32xf32>
    %124 = arith.mulf %123, %123 : vector<16x32xf32>
    %cst_34 = arith.constant dense<0.000000e+00> : vector<16xf32>
    %125 = vector.multi_reduction <add>, %124, %cst_34 [1] : vector<16x32xf32> to vector<16xf32>
    %126 = vector.shape_cast %125 : vector<16xf32> to vector<16x1xf32>
    %cst_35 = arith.constant 3.200000e+01 : f32
    %127 = vector.broadcast %cst_35 : f32 to vector<16x1xf32>
    %128 = arith.divf %126, %127 : vector<16x1xf32>
    %cst_36 = arith.constant 9.99999974E-6 : f32
    %129 = vector.broadcast %cst_36 : f32 to vector<16x1xf32>
    %130 = arith.addf %128, %129 : vector<16x1xf32>
    %131 = math.rsqrt %130 : vector<16x1xf32>
    %132 = vector.broadcast %131 : vector<16x1xf32> to vector<16x32xf32>
    %133 = arith.mulf %123, %132 : vector<16x32xf32>
    %134 = vector.broadcast %6 : vector<1x32xf32> to vector<16x32xf32>
    %135 = arith.mulf %133, %134 : vector<16x32xf32>
    %136 = vector.broadcast %7 : vector<1x32xf32> to vector<16x32xf32>
    %137 = arith.addf %135, %136 : vector<16x32xf32>
    %c0_37 = arith.constant 0 : index
    %c0_38 = arith.constant 0 : index
    %138 = vector.load %arg4[%c0_37, %c0_38] : memref<32x64xf32, #tpu.memory_space<vmem>>, vector<32x64xf32>
    %cst_39 = arith.constant dense<0.000000e+00> : vector<16x64xf32>
    %139 = tpu.matmul %137, %138, %cst_39 {dimension_numbers = #tpu.dot_dimension_numbers<[1], [0], [0], [1], [0, 0, 1, 1], [], []>} : vector<16x32xf32>, vector<32x64xf32>, vector<16x64xf32> -> vector<16x64xf32>
    %140 = vector.broadcast %4 : vector<1x64xf32> to vector<16x64xf32>
    %141 = arith.addf %139, %140 : vector<16x64xf32>
    %cst_40 = arith.constant 0.000000e+00 : f32
    %142 = vector.broadcast %cst_40 : f32 to vector<16x64xf32>
    %143 = arith.maximumf %141, %142 : vector<16x64xf32>
    %c0_41 = arith.constant 0 : index
    %c0_42 = arith.constant 0 : index
    %144 = vector.load %arg5[%c0_41, %c0_42] : memref<64x32xf32, #tpu.memory_space<vmem>>, vector<64x32xf32>
    %cst_43 = arith.constant dense<0.000000e+00> : vector<16x32xf32>
    %145 = tpu.matmul %143, %144, %cst_43 {dimension_numbers = #tpu.dot_dimension_numbers<[1], [0], [0], [1], [0, 0, 1, 1], [], []>} : vector<16x64xf32>, vector<64x32xf32>, vector<16x32xf32> -> vector<16x32xf32>
    %146 = vector.broadcast %5 : vector<1x32xf32> to vector<16x32xf32>
    %147 = arith.addf %145, %146 : vector<16x32xf32>
    %148 = arith.addf %147, %137 : vector<16x32xf32>
    %cst_44 = arith.constant dense<0.000000e+00> : vector<16xf32>
    %149 = vector.multi_reduction <add>, %148, %cst_44 [1] : vector<16x32xf32> to vector<16xf32>
    %150 = vector.shape_cast %149 : vector<16xf32> to vector<16x1xf32>
    %cst_45 = arith.constant 3.200000e+01 : f32
    %151 = vector.broadcast %cst_45 : f32 to vector<16x1xf32>
    %152 = arith.divf %150, %151 : vector<16x1xf32>
    %153 = vector.broadcast %152 : vector<16x1xf32> to vector<16x32xf32>
    %154 = arith.subf %148, %153 : vector<16x32xf32>
    %155 = arith.mulf %154, %154 : vector<16x32xf32>
    %cst_46 = arith.constant dense<0.000000e+00> : vector<16xf32>
    %156 = vector.multi_reduction <add>, %155, %cst_46 [1] : vector<16x32xf32> to vector<16xf32>
    %157 = vector.shape_cast %156 : vector<16xf32> to vector<16x1xf32>
    %cst_47 = arith.constant 3.200000e+01 : f32
    %158 = vector.broadcast %cst_47 : f32 to vector<16x1xf32>
    %159 = arith.divf %157, %158 : vector<16x1xf32>
    %cst_48 = arith.constant 9.99999974E-6 : f32
    %160 = vector.broadcast %cst_48 : f32 to vector<16x1xf32>
    %161 = arith.addf %159, %160 : vector<16x1xf32>
    %162 = math.rsqrt %161 : vector<16x1xf32>
    %163 = vector.broadcast %162 : vector<16x1xf32> to vector<16x32xf32>
    %164 = arith.mulf %154, %163 : vector<16x32xf32>
    %165 = vector.broadcast %8 : vector<1x32xf32> to vector<16x32xf32>
    %166 = arith.mulf %164, %165 : vector<16x32xf32>
    %167 = vector.broadcast %9 : vector<1x32xf32> to vector<16x32xf32>
    %168 = arith.addf %166, %167 : vector<16x32xf32>
    %c0_49 = arith.constant 0 : index
    %c0_50 = arith.constant 0 : index
    %169 = vector.load %arg7[%c0_49, %c0_50] : memref<16x32xf32, #tpu.memory_space<vmem>>, vector<16x32xf32>
    tpu.vector_store %arg7[%c0_49, %c0_50], %168 {strides = array<i32>} : memref<16x32xf32, #tpu.memory_space<vmem>>, vector<16x32xf32>,
    return
  }
  func.func @transform_0(%arg0: i32) -> (i32, i32) {
    %c0_i32 = arith.constant 0 : i32
    %c0_i32_0 = arith.constant 0 : i32
    return %arg0, %c0_i32 : i32, i32
  }
  func.func @transform_1(%arg0: i32) -> (i32, i32) {
    %c0_i32 = arith.constant 0 : i32
    %c0_i32_0 = arith.constant 0 : i32
    %c0_i32_1 = arith.constant 0 : i32
    return %c0_i32, %c0_i32_0 : i32, i32
  }
  func.func @transform_2(%arg0: i32) -> (i32, i32) {
    %c0_i32 = arith.constant 0 : i32
    %c0_i32_0 = arith.constant 0 : i32
    %c0_i32_1 = arith.constant 0 : i32
    return %c0_i32, %c0_i32_0 : i32, i32
  }
  func.func @transform_3(%arg0: i32) -> (i32, i32) {
    %c0_i32 = arith.constant 0 : i32
    %c0_i32_0 = arith.constant 0 : i32
    %c0_i32_1 = arith.constant 0 : i32
    return %c0_i32, %c0_i32_0 : i32, i32
  }
  func.func @transform_4(%arg0: i32) -> (i32, i32) {
    %c0_i32 = arith.constant 0 : i32
    %c0_i32_0 = arith.constant 0 : i32
    %c0_i32_1 = arith.constant 0 : i32
    return %c0_i32, %c0_i32_0 : i32, i32
  }
  func.func @transform_5(%arg0: i32) -> (i32, i32) {
    %c0_i32 = arith.constant 0 : i32
    %c0_i32_0 = arith.constant 0 : i32
    %c0_i32_1 = arith.constant 0 : i32
    return %c0_i32, %c0_i32_0 : i32, i32
  }
  func.func @transform_6(%arg0: i32) -> (i32, i32) {
    %c0_i32 = arith.constant 0 : i32
    %c0_i32_0 = arith.constant 0 : i32
    return %arg0, %c0_i32 : i32, i32
  }
}

</mosaic_0001>

<bundles_post_ra>
// kernel: tpu_custom_call.1
= control target key start
LH: loop header
LB: loop body
LE: loop exit
PB: predicated region body
PF: predicated region fallthrough
CT: control target
= control target key end

     0   :  { %11 = vsyncpa [#allocation3], 0  ;;  %s1390_s0 = inlined_call_operand.hbm [shape: f32[16,32], index: 0, kind: input, shape index: {}]   ;;  %s1391_s1 = inlined_call_operand.vmem [shape: f32[32,96], index: 1, kind: input, shape index: {}]   ;;  %s1392_s2 = inlined_call_operand.vmem [shape: f32[32,32], index: 2, kind: input, shape index: {}]   ;;  %s1393_s3 = inlined_call_operand.vmem [shape: f32[32,64], index: 3, kind: input, shape index: {}]   ;;  %s1394_s4 = inlined_call_operand.vmem [shape: f32[64,32], index: 4, kind: input, shape index: {}]   ;;  %s1395_s5 = inlined_call_operand.hbm [shape: f32[8,96], index: 5, kind: input, shape index: {}]   ;;  %s1396_s6 = inlined_call_operand.hbm [shape: f32[16,32], index: 6, kind: output, shape index: {}]  }
   0x1   :  { %12 = vsyncpa [#allocation6], 0 }
   0x2   :  { %13 = vsyncpa [#allocation4], 0  ;;  %s18_s23 = sshll.u32 %s1390_s0, 4  ;;  %s1129_s24 = smov [#allocation2]   ;;  %s19_s23 = int_to_ptr.hbm [resolvable:$true] %s18_s23 }
   0x3   :  { %s20_s25 = sshll.u32 %s1129_s24, 4  ;;  %s40_s28 = sshll.u32 %s1395_s5, 4  ;;  %s21_s25 = int_to_ptr.vmem [resolvable:$true] %s20_s25  ;;  %s41_s28 = int_to_ptr.hbm [resolvable:$true] %s40_s28 }
   0x4   :  { %s1130_s29 = smov 128   ;;  %s1131_s30 = smov 8  }
   0x5   :  { %26 = dma.hbm_to_vmem [thread:$0]  %s19_s23, 256, %s21_s25, [#allocation3], %s1130_s29, %s1130_s29, %s1131_s30  }
   0x6   :  { %s1132_s7 = smov [#allocation5]  }
   0x7   :  { %s42_s8 = sshll.u32 %s1132_s7, 4  ;;  %s43_s8 = int_to_ptr.vmem [resolvable:$true] %s42_s8 }
   0x8   :  { %45 = dma.hbm_to_vmem [thread:$0]  %s41_s28, 128, %s43_s8, [#allocation6]  }
   0x9   :  { %1123 = dma.done.wait [#allocation3], 256  }
   0xa   :  { %1124 = vsyncadd [#allocation3], 4294967040 }
   0xb   :  { %1125 = dma.done.wait [#allocation6], 128  }
   0xc   :  { %1126 = vsyncadd [#allocation6], 4294967168  ;;  %v60_v0 = vld [vmem:[%s1391_s1 + $0x18] sm:$0xff]  ;;  %v59_v1 = vld [vmem:[%s1391_s1 + $0x10] sm:$0xff]  ;;  %vm62_vm0 = vcmask 261120   ;;  %s1134_s15 = smov 96  }
   0xd   :  { %81 = vmatpush.msra.mxu0 %v60_v0  ;;  %v58_v2 = vld [vmem:[%s1391_s1 + $0x8] sm:$0xff]  ;;  %v57_v3 = vld [vmem:[%s1391_s1] sm:$0xff]  ;;  %v1210_v6 = vld [vmem:[#allocation5] sm:$0xff]  ;;  %s1133_s1 = smov 88   ;;  %s1135_s16 = smov 120   ;;  %vm99_vm1 = vcmask 64512  }
   0xe   :  { %v1202_v4 = vld [vmem:[#allocation2] sm:$0xff]  ;;  %v1206_v5 = vld [vmem:[#allocation2 + $0x8] sm:$0xff]  ;;  %v61_v7 = vperm.slane %v1210_v6, 0  ;;  %s1136_s17 = smov 64   ;;  %s1137_s18 = smov 80   ;;  %vm850_vm9 = vcmask 523264  }
   0xf   :  { %82 = vmatpush.msra.mxu0 %v59_v1  ;;  %s1138_s19 = smov 56   ;;  %s1139_s20 = smov 112   ;;  %v92_v59 = vld [vmem:[%s1392_s2] sm:$0xff]  ;;  %v93_v60 = vld [vmem:[%s1392_s2 + $0x8] sm:$0xff] }
  0x10   :  { %s1140_s21 = smov 48   ;;  %s1141_s22 = smov 72  }
  0x11   :  { %83 = vmatpush.msra.mxu0 %v58_v2  ;;  %s1142_s23 = smov 104   ;;  %s1143_s8 = smov 40  }
  0x13   :  { %84 = vmatpush.msra.mxu0 %v57_v3 }
  0x14   :  { %954 = vmatmul.msk.f32.vlgmr.msra.gmra.mxu0 %vm62_vm0, %v1202_v4 }
  0x1c   :  { %955 = vmatmul.msk.f32.gmra.mxu0 %vm62_vm0, %v1206_v5 }
  0x91   :  { %v86_v8 = vpop.f32.mrf.mxu0 }
  0x92   :  { %v1213_v9 = vadd.f32 %v86_v8, %v61_v7 }
  0x94   :  { %229 = vrot.lane.b32.xlu1 %v1213_v9, %s1133_s1  ;;  %97 = vrot.lane.b32.xlu0 %v1213_v9, %s1134_s15 }
  0x99   :  { %v89_v10 = vpop.f32.mrf.mxu0 }
  0x9a   :  { %v1217_v11 = vadd.f32 %v89_v10, %v61_v7 }
  0x9c   :  { %227 = vrot.lane.b32.xlu1 %v1213_v9, %s1135_s16  ;;  %125 = vrot.lane.b32.xlu0 %v1217_v11, %s1134_s15 }
  0xa4   :  { %257 = vrot.lane.b32.xlu1 %v1217_v11, %s1133_s1 }
 0x106   :  { %v230_v12 = vpop.permute.xlu1 %229  ;;  %v98_v13 = vpop.permute.xlu0 %97 }
 0x107   :  { %956 = vmatpush.xpose.msk.msrb.mxu0 %vm99_vm1, %v98_v13  ;;  %962 = vmatpush.xpose.msk.msra.mxu1 %vm99_vm1, %v230_v12 }
 0x10a   :  { %957 = vmatmul.msk.f32.vlgmr.msrb.gmra.mxu0 %vm99_vm1, %v1213_v9 }
 0x10b   :  { %409 = vmatpush.msra.mxu0 %v92_v59 }
 0x10e   :  { %v228_v14 = vpop.permute.xlu1 %227  ;;  %v126_v15 = vpop.permute.xlu0 %125 }
 0x10f   :  { %958 = vmatpush.xpose.msk.msra.mxu2 %vm99_vm1, %v126_v15  ;;  %963 = vmatmul.msk.f32.vlgmr.msra.gmra.mxu1 %vm99_vm1, %v228_v14 }
 0x112   :  { %959 = vmatmul.msk.f32.vlgmr.msra.gmra.mxu2 %vm99_vm1, %v1217_v11 }
 0x116   :  { %v258_v16 = vpop.permute.xlu1 %257 }
 0x117   :  { %964 = vmatpush.xpose.msk.msrb.mxu2 %vm99_vm1, %v258_v16 }
 0x11b   :  { %380 = vmatpush.msra.mxu2 %v93_v60 }
 0x187   :  { %v121_v17 = vpop.f32.mrf.mxu0 }
 0x188   :  { %v151_v18 = vmul.f32 0.35355338, %v121_v17 }
 0x18a   :  { %v153_v19 = vsel %vm99_vm1, %v151_v18, -inf }
 0x18b   :  { %154 = vmax.xlane.f32.xlu2 %v153_v19 }
 0x18c   :  { %v252_v20 = vpop.f32.mrf.mxu1 }
 0x18d   :  { %v283_v21 = vmul.f32 0.35355338, %v252_v20 }
 0x18f   :  { %v285_v22 = vsel %vm99_vm1, %v283_v21, -inf }
 0x190   :  { %286 = vmax.xlane.f32.xlu0 %v285_v22 }
 0x195   :  { %v148_v23 = vpop.f32.mrf.mxu2 }
 0x196   :  { %v152_v24 = vmul.f32 0.35355338, %v148_v23 }
 0x198   :  { %v156_v25 = vsel %vm99_vm1, %v152_v24, -inf }
 0x199   :  { %157 = vmax.xlane.f32.xlu2 %v156_v25 }
 0x1a4   :  { %201 = vrot.lane.b32.xlu0 %v1217_v11, %s1136_s17 }
 0x1ac   :  { %255 = vrot.lane.b32.xlu0 %v1217_v11, %s1135_s16 }
 0x1b1   :  { %175 = vrot.lane.b32.xlu2 %v1213_v9, %s1136_s17 }
 0x1b4   :  { %419 = vrot.lane.b32.xlu0 %v1213_v9, %s1137_s18 }
 0x1bc   :  { %447 = vrot.lane.b32.xlu0 %v1217_v11, %s1137_s18 }
 0x1fe   :  { %v155_v26 = vpop.xlane.xlu2 %154 }
 0x1ff   :  { %v159_v27 = vsub.f32 %v151_v18, %v155_v26 }
 0x201   :  { %v161_v28 = vmul.f32 1.442695, %v159_v27 }
 0x203   :  { %1009 = vpow2.f32 %v161_v28  ;;  %v287_v29 = vpop.xlane.xlu0 %286 }
 0x204   :  { %v291_v30 = vsub.f32 %v283_v21, %v287_v29 }
 0x206   :  { %v293_v31 = vmul.f32 1.442695, %v291_v30 }
 0x208   :  { %1011 = vpow2.f32 %v293_v31 }
 0x209   :  { %v1010_v32 = vpop.eup %1009 }
 0x20a   :  { %v165_v33 = vsel %vm99_vm1, %v1010_v32, 0.0 }
 0x20b   :  { %166 = vadd.xlane.f32.xlu1 %v165_v33 }
 0x20c   :  { %v158_v34 = vpop.xlane.xlu2 %157 }
 0x20d   :  { %v160_v35 = vsub.f32 %v152_v24, %v158_v34 }
 0x20e   :  { %v1012_v36 = vpop.eup %1011 }
 0x20f   :  { %v163_v37 = vmul.f32 1.442695, %v160_v35  ;;  %v297_v38 = vsel %vm99_vm1, %v1012_v36, 0.0 }
 0x210   :  { %298 = vadd.xlane.f32.xlu2 %v297_v38 }
 0x211   :  { %1013 = vpow2.f32 %v163_v37 }
 0x214   :  { %v176_v39 = vpop.permute.xlu2 %175 }
 0x215   :  { %196 = vmatpush.msra.mxu3 %v176_v39 }
 0x216   :  { %v202_v40 = vpop.permute.xlu0 %201 }
 0x217   :  { %v1014_v41 = vpop.eup %1013  ;;  %222 = vmatpush.msrb.mxu3 %v202_v40 }
 0x218   :  { %v168_v42 = vsel %vm99_vm1, %v1014_v41, 0.0 }
 0x219   :  { %169 = vadd.xlane.f32.xlu2 %v168_v42 }
 0x21e   :  { %v256_v43 = vpop.permute.xlu0 %255 }
 0x21f   :  { %965 = vmatmul.msk.f32.vlgmr.msrb.gmra.mxu2 %vm99_vm1, %v256_v43 }
 0x224   :  { %307 = vrot.lane.b32.xlu1 %v1213_v9, %s1138_s19 }
 0x226   :  { %v420_v52 = vpop.permute.xlu0 %419 }
 0x22e   :  { %v448_v14 = vpop.permute.xlu0 %447 }
 0x231   :  { %417 = vrot.lane.b32.xlu2 %v1213_v9, %s1139_s20 }
 0x27e   :  { %v167_v44 = vpop.xlane.xlu1 %166 }
 0x27f   :  { %1015 = vrcp.f32 %v167_v44 }
 0x283   :  { %v299_v45 = vpop.xlane.xlu2 %298 }
 0x285   :  { %v1016_v46 = vpop.eup %1015 }
 0x286   :  { %v173_v47 = vmul.f32 %v1016_v46, %v1010_v32 }
 0x288   :  { %960 = vmatmul.msk.f32.vlgmr.msra.gmra.mxu3 %vm99_vm1, %v173_v47 }
 0x28c   :  { %v170_v48 = vpop.xlane.xlu2 %169 }
 0x28d   :  { %1017 = vrcp.f32 %v170_v48 }
 0x28e   :  { %1019 = vrcp.f32 %v299_v45 }
 0x293   :  { %v1018_v49 = vpop.eup %1017 }
 0x294   :  { %v174_v50 = vmul.f32 %v1018_v49, %v1014_v41  ;;  %v1020_v53 = vpop.eup %1019  ;;  %v418_v57 = vpop.permute.xlu2 %417 }
 0x295   :  { %v305_v54 = vmul.f32 %v1020_v53, %v1012_v36  ;;  %v94_v36 = vld [vmem:[%s1392_s2 + $0x10] sm:$0xff] }
 0x296   :  { %v308_v51 = vpop.permute.xlu1 %307  ;;  %961 = vmatmul.msk.f32.vlgmr.msrb.gmra.mxu3 %vm99_vm1, %v174_v50  ;;  %570 = vmatpush.msrb.mxu2 %v94_v36 }
 0x297   :  { %328 = vmatpush.msra.mxu3 %v308_v51 }
 0x299   :  { %972 = vmatpush.xpose.msk.msrb.mxu3 %vm99_vm1, %v420_v52 }
 0x29e   :  { %966 = vmatmul.msk.f32.vlgmr.msra.gmra.mxu3 %vm99_vm1, %v305_v54 }
 0x2a2   :  { %v280_v55 = vpop.f32.mrf.mxu2 }
 0x2a3   :  { %v284_v56 = vmul.f32 0.35355338, %v280_v55 }
 0x2a5   :  { %v288_v58 = vsel %vm99_vm1, %v284_v56, -inf }
 0x2a6   :  { %289 = vmax.xlane.f32.xlu1 %v288_v58  ;;  %973 = vmatmul.msk.f32.vlgmr.msrb.gmra.mxu3 %vm99_vm1, %v418_v57 }
 0x2bf   :  { %333 = vrot.lane.b32.xlu1 %v1217_v11, %s1138_s19 }
 0x2c7   :  { %497 = vrot.lane.b32.xlu1 %v1213_v9, %s1140_s21 }
 0x2cf   :  { %610 = vrot.lane.b32.xlu1 %v1217_v11, %s1141_s22 }
 0x2d7   :  { %608 = vrot.lane.b32.xlu1 %v1217_v11, %s1142_s23 }
 0x30b   :  { %v198_v61 = vpop.f32.mrf.mxu3 }
 0x30c   :  { %970 = vmatmul.msk.f32.vlgmr.msra.gmra.mxu0 %vm99_vm1, %v198_v61 }
 0x319   :  { %v224_v62 = vpop.f32.mrf.mxu3  ;;  %v290_v63 = vpop.xlane.xlu1 %289 }
 0x31a   :  { %v292_v0 = vsub.f32 %v284_v56, %v290_v63  ;;  %971 = vmatmul.msk.f32.gmra.mxu0 %vm99_vm1, %v224_v62 }
 0x31c   :  { %v295_v1 = vmul.f32 1.442695, %v292_v0 }
 0x31e   :  { %1021 = vpow2.f32 %v295_v1 }
 0x321   :  { %v330_v2 = vpop.f32.mrf.mxu3 }
 0x322   :  { %968 = vmatmul.msk.f32.vlgmr.msra.gmra.mxu2 %vm99_vm1, %v330_v2 }
 0x324   :  { %v1022_v3 = vpop.eup %1021 }
 0x325   :  { %v300_v7 = vsel %vm99_vm1, %v1022_v3, 0.0 }
 0x326   :  { %301 = vadd.xlane.f32.xlu2 %v300_v7 }
 0x329   :  { %v442_v8 = vpop.f32.mrf.mxu3 }
 0x32a   :  { %v473_v10 = vmul.f32 0.35355338, %v442_v8 }
 0x32c   :  { %v475_v12 = vsel %vm99_vm1, %v473_v10, -inf }
 0x32d   :  { %476 = vmax.xlane.f32.xlu0 %v475_v12 }
 0x331   :  { %v334_v13 = vpop.permute.xlu1 %333 }
 0x332   :  { %354 = vmatpush.msrb.mxu1 %v334_v13 }
 0x334   :  { %974 = vmatpush.xpose.msk.msra.mxu1 %vm99_vm1, %v448_v14 }
 0x339   :  { %v498_v15 = vpop.permute.xlu1 %497 }
 0x33a   :  { %518 = vmatpush.msra.mxu3 %v498_v15 }
 0x33e   :  { %445 = vrot.lane.b32.xlu2 %v1217_v11, %s1139_s20 }
 0x341   :  { %v611_v16 = vpop.permute.xlu1 %610  ;;  %582 = vrot.lane.b32.xlu0 %v1213_v9, %s1141_s22 }
 0x342   :  { %982 = vmatpush.xpose.msk.msrb.mxu3 %vm99_vm1, %v611_v16 }
 0x349   :  { %v609_v34 = vpop.permute.xlu1 %608 }
 0x389   :  { %v1292_v39 = vpop.f32.mrf.mxu0 }
 0x397   :  { %v1294_v41 = vpop.f32.mrf.mxu0 }
 0x399   :  { %v302_v17 = vpop.xlane.xlu2 %301 }
 0x39a   :  { %1023 = vrcp.f32 %v302_v17 }
 0x3a0   :  { %v1024_v18 = vpop.eup %1023  ;;  %v477_v19 = vpop.xlane.xlu0 %476 }
 0x3a1   :  { %v481_v20 = vsub.f32 %v473_v10, %v477_v19  ;;  %v306_v21 = vmul.f32 %v1024_v18, %v1022_v3  ;;  %v446_v23 = vpop.permute.xlu2 %445 }
 0x3a3   :  { %v483_v22 = vmul.f32 1.442695, %v481_v20  ;;  %967 = vmatmul.msk.f32.vlgmr.msrb.gmra.mxu1 %vm99_vm1, %v306_v21  ;;  %v743_v21 = vperm.slane %v1210_v6, 1 }
 0x3a5   :  { %1025 = vpow2.f32 %v483_v22  ;;  %v382_v16 = vpop.f32.mrf.mxu2 }
 0x3a6   :  { %v412_v19 = vadd.f32 %v1292_v39, %v382_v16  ;;  %v802_v16 = vperm.slane %v1210_v6, 5 }
 0x3ab   :  { %v1026_v24 = vpop.eup %1025  ;;  %975 = vmatmul.msk.f32.vlgmr.msra.gmra.mxu1 %vm99_vm1, %v446_v23 }
 0x3ac   :  { %v487_v25 = vsel %vm99_vm1, %v1026_v24, 0.0 }
 0x3ad   :  { %488 = vadd.xlane.f32.xlu0 %v487_v25 }
 0x3b3   :  { %v583_v26 = vpop.permute.xlu0 %582 }
 0x3b4   :  { %980 = vmatpush.xpose.msk.msrb.mxu0 %vm99_vm1, %v583_v26 }
 0x3c1   :  { %580 = vrot.lane.b32.xlu0 %v1213_v9, %s1142_s23 }
 0x420   :  { %v356_v27 = vpop.f32.mrf.mxu1  ;;  %v489_v28 = vpop.xlane.xlu0 %488 }
 0x421   :  { %1027 = vrcp.f32 %v489_v28  ;;  %969 = vmatmul.msk.f32.gmra.mxu2 %vm99_vm1, %v356_v27 }
 0x427   :  { %v1028_v29 = vpop.eup %1027 }
 0x428   :  { %v495_v30 = vmul.f32 %v1028_v29, %v1026_v24  ;;  %v470_v31 = vpop.f32.mrf.mxu1 }
 0x429   :  { %v474_v32 = vmul.f32 0.35355338, %v470_v31 }
 0x42a   :  { %976 = vmatmul.msk.f32.vlgmr.msra.gmra.mxu3 %vm99_vm1, %v495_v30 }
 0x42b   :  { %v478_v33 = vsel %vm99_vm1, %v474_v32, -inf }
 0x42c   :  { %479 = vmax.xlane.f32.xlu2 %v478_v33 }
 0x432   :  { %983 = vmatmul.msk.f32.vlgmr.msrb.gmra.mxu3 %vm99_vm1, %v609_v34 }
 0x433   :  { %v581_v35 = vpop.permute.xlu0 %580 }
 0x434   :  { %981 = vmatmul.msk.f32.vlgmr.msrb.gmra.mxu0 %vm99_vm1, %v581_v35  ;;  %v1144_v35 = vmov 32.0  }
 0x49f   :  { %v480_v37 = vpop.xlane.xlu2 %479 }
 0x4a0   :  { %v482_v38 = vsub.f32 %v474_v32, %v480_v37 }
 0x4a2   :  { %v485_v40 = vmul.f32 1.442695, %v482_v38 }
 0x4a4   :  { %1029 = vpow2.f32 %v485_v40  ;;  %v385_v17 = vpop.f32.mrf.mxu2 }
 0x4a5   :  { %v415_v26 = vadd.f32 %v1294_v41, %v385_v17 }
 0x4aa   :  { %v1030_v42 = vpop.eup %1029 }
 0x4ab   :  { %v490_v43 = vsel %vm99_vm1, %v1030_v42, 0.0 }
 0x4ac   :  { %491 = vadd.xlane.f32.xlu2 %v490_v43 }
 0x4ad   :  { %v520_v44 = vpop.f32.mrf.mxu3 }
 0x4ae   :  { %978 = vmatmul.msk.f32.vlgmr.msrb.gmra.mxu2 %vm99_vm1, %v520_v44 }
 0x4b1   :  { %v605_v45 = vpop.f32.mrf.mxu0 }
 0x4b2   :  { %v636_v46 = vmul.f32 0.35355338, %v605_v45 }
 0x4b4   :  { %v638_v47 = vsel %vm99_vm1, %v636_v46, -inf }
 0x4b5   :  { %v633_v48 = vpop.f32.mrf.mxu3  ;;  %639 = vmax.xlane.f32.xlu0 %v638_v47 }
 0x4b6   :  { %v637_v49 = vmul.f32 0.35355338, %v633_v48 }
 0x4b8   :  { %v641_v50 = vsel %vm99_vm1, %v637_v49, -inf }
 0x4b9   :  { %642 = vmax.xlane.f32.xlu1 %v641_v50  ;;  %v808_v50 = vld [vmem:[%s1393_s3 + $0x18] sm:$0xff] }
 0x4d2   :  { %523 = vrot.lane.b32.xlu1 %v1217_v11, %s1140_s21 }
 0x51f   :  { %v492_v60 = vpop.xlane.xlu2 %491 }
 0x528   :  { %v640_v51 = vpop.xlane.xlu0 %639 }
 0x529   :  { %v644_v52 = vsub.f32 %v636_v46, %v640_v51  ;;  %v807_v51 = vld [vmem:[%s1393_s3 + $0x10] sm:$0xff] }
 0x52b   :  { %v646_v53 = vmul.f32 1.442695, %v644_v52  ;;  %v806_v52 = vld [vmem:[%s1393_s3 + $0x8] sm:$0xff] }
 0x52c   :  { %v643_v54 = vpop.xlane.xlu1 %642 }
 0x52d   :  { %1031 = vpow2.f32 %v646_v53  ;;  %v645_v55 = vsub.f32 %v637_v49, %v643_v54  ;;  %v805_v53 = vld [vmem:[%s1393_s3] sm:$0xff] }
 0x52f   :  { %v648_v56 = vmul.f32 1.442695, %v645_v55 }
 0x531   :  { %1033 = vpow2.f32 %v648_v56  ;;  %v572_v18 = vpop.f32.mrf.mxu2 }
 0x532   :  { %1035 = vrcp.f32 %v492_v60  ;;  %v578_v20 = vadd.f32 %v572_v18, %v412_v19 }
 0x533   :  { %v1032_v57 = vpop.eup %1031 }
 0x534   :  { %v650_v58 = vsel %vm99_vm1, %v1032_v57, 0.0 }
 0x535   :  { %651 = vadd.xlane.f32.xlu0 %v650_v58  ;;  %v847_v58 = vld [vmem:[%s1394_s4 + $0x30] sm:$0xff] }
 0x537   :  { %v1034_v59 = vpop.eup %1033 }
 0x538   :  { %v653_v61 = vsel %vm99_vm1, %v1034_v59, 0.0  ;;  %v1036_v62 = vpop.eup %1035 }
 0x539   :  { %654 = vadd.xlane.f32.xlu2 %v653_v61  ;;  %v496_v63 = vmul.f32 %v1036_v62, %v1030_v42  ;;  %v845_v62 = vld [vmem:[%s1394_s4 + $0x20] sm:$0xff] }
 0x544   :  { %v524_v0 = vpop.permute.xlu1 %523 }
 0x545   :  { %544 = vmatpush.msrb.mxu1 %v524_v0 }
 0x546   :  { %977 = vmatmul.msk.f32.vlgmr.msrb.gmra.mxu1 %vm99_vm1, %v496_v63 }
 0x549   :  { %660 = vrot.lane.b32.xlu0 %v1213_v9, %s1143_s8  ;;  %v95_v9 = vld [vmem:[%s1392_s2 + $0x18] sm:$0xff]  ;;  %s940_s2 = sshll.u32 %s1396_s6, 4  ;;  %s941_s2 = int_to_ptr.hbm [resolvable:$true] %s940_s2 }
 0x54a   :  { %733 = vmatpush.msra.mxu3 %v95_v9 }
 0x551   :  { %686 = vrot.lane.b32.xlu2 %v1217_v11, %s1143_s8 }
 0x5a8   :  { %v652_v2 = vpop.xlane.xlu0 %651 }
 0x5ac   :  { %v655_v1 = vpop.xlane.xlu2 %654 }
 0x5ad   :  { %1037 = vrcp.f32 %v655_v1  ;;  %v844_v1 = vld [vmem:[%s1394_s4 + $0x18] sm:$0xff] }
 0x5ae   :  { %1039 = vrcp.f32 %v652_v2 }
 0x5af   :  { %1041 = vrcp.f32 %v1144_v35 }
 0x5b3   :  { %v1038_v3 = vpop.eup %1037 }
 0x5b4   :  { %v659_v7 = vmul.f32 %v1038_v3, %v1034_v59  ;;  %v687_v8 = vpop.permute.xlu2 %686  ;;  %v1040_v10 = vpop.eup %1039  ;;  %v846_v59 = vld [vmem:[%s1394_s4 + $0x28] sm:$0xff] }
 0x5b5   :  { %707 = vmatpush.msra.mxu0 %v687_v8  ;;  %v658_v12 = vmul.f32 %v1040_v10, %v1032_v57  ;;  %v1042_v36 = vpop.eup %1041  ;;  %v848_v57 = vld [vmem:[%s1394_s4 + $0x38] sm:$0xff] }
 0x5b6   :  { %985 = vmatmul.msk.f32.vlgmr.msra.gmra.mxu0 %vm99_vm1, %v659_v7  ;;  %v755_v37 = vmul.f32 32.0, %v1042_v36  ;;  %vm759_vm2 = vweird.f32 %v1042_v36  ;;  %865 = vmatpush.msra.mxu2 %v848_v57 }
 0x5b8   :  { %v756_v38 = vsub.f32 1.0, %v755_v37  ;;  %866 = vmatpush.msra.mxu2 %v847_v58 }
 0x5ba   :  { %v757_v39 = vmul.f32 %v1042_v36, %v756_v38  ;;  %867 = vmatpush.msra.mxu2 %v846_v59 }
 0x5bb   :  { %v661_v13 = vpop.permute.xlu0 %660 }
 0x5bc   :  { %681 = vmatpush.msra.mxu1 %v661_v13  ;;  %v758_v40 = vadd.f32 %v1042_v36, %v757_v39  ;;  %868 = vmatpush.msra.mxu2 %v845_v62 }
 0x5bd   :  { %984 = vmatmul.msk.f32.vlgmr.msra.gmra.mxu1 %vm99_vm1, %v658_v12 }
 0x5be   :  { %828 = vmatpush.msrb.mxu1 %v808_v50  ;;  %869 = vmatpush.msra.mxu2 %v844_v1 }
 0x5c0   :  { %829 = vmatpush.msrb.mxu1 %v807_v51 }
 0x5c2   :  { %830 = vmatpush.msrb.mxu1 %v806_v52 }
 0x5c3   :  { %v546_v14 = vpop.f32.mrf.mxu1 }
 0x5c4   :  { %979 = vmatmul.msk.f32.gmra.mxu2 %vm99_vm1, %v546_v14  ;;  %831 = vmatpush.msrb.mxu1 %v805_v53  ;;  %v799_v14 = vperm.slane %v1210_v6, 4 }
 0x633   :  { %v709_v15 = vpop.f32.mrf.mxu0 }
 0x63a   :  { %v683_v11 = vpop.f32.mrf.mxu1 }
 0x63b   :  { %986 = vmatmul.msk.f32.vlgmr.msra.gmra.mxu3 %vm99_vm1, %v683_v11 }
 0x643   :  { %987 = vmatmul.msk.f32.gmra.mxu3 %vm99_vm1, %v709_v15 }
 0x647   :  { %v575_v25 = vpop.f32.mrf.mxu2 }
 0x648   :  { %v579_v28 = vadd.f32 %v575_v25, %v415_v26  ;;  %v843_v26 = vld [vmem:[%s1394_s4 + $0x10] sm:$0xff] }
 0x649   :  { %870 = vmatpush.msra.mxu2 %v843_v26 }
 0x6be   :  { %v735_v22 = vpop.f32.mrf.mxu3 }
 0x6bf   :  { %v741_v23 = vadd.f32 %v735_v22, %v578_v20 }
 0x6c1   :  { %v744_v24 = vadd.f32 %v743_v21, %v741_v23 }
 0x6c3   :  { %v746_v27 = vadd.f32 %v744_v24, %v1202_v4  ;;  %v1322_v4 = vsel %vm759_vm2, %v1042_v36, %v758_v40  ;;  %v849_v36 = vperm.slane %v1210_v6, 3 }
 0x6c5   :  { %v748_v29 = vsel %vm62_vm0, %v746_v27, 0.0 }
 0x6c6   :  { %749 = vadd.xlane.f32.xlu1 %v748_v29  ;;  %v738_v30 = vpop.f32.mrf.mxu3  ;;  %v809_v29 = vperm.slane %v1210_v6, 2 }
 0x6c7   :  { %v742_v31 = vadd.f32 %v738_v30, %v579_v28  ;;  %v841_v28 = vld [vmem:[%s1394_s4] sm:$0xff] }
 0x6c9   :  { %v745_v32 = vadd.f32 %v743_v21, %v742_v31 }
 0x6cb   :  { %v747_v33 = vadd.f32 %v745_v32, %v1206_v5 }
 0x6cd   :  { %v751_v34 = vsel %vm62_vm0, %v747_v33, 0.0 }
 0x6ce   :  { %752 = vadd.xlane.f32.xlu0 %v751_v34 }
 0x739   :  { %v750_v41 = vpop.xlane.xlu1 %749 }
 0x73a   :  { %v761_v42 = vmul.f32 %v1322_v4, %v750_v41 }
 0x73c   :  { %v763_v43 = vsub.f32 %v746_v27, %v761_v42  ;;  %v842_v27 = vld [vmem:[%s1394_s4 + $0x8] sm:$0xff]  ;;  %s1145_s4 = smov [#allocation7]  }
 0x73d   :  { %871 = vmatpush.msra.mxu2 %v842_v27  ;;  %s938_s8 = sshll.u32 %s1145_s4, 4  ;;  %s939_s8 = int_to_ptr.vmem [resolvable:$true] %s938_s8 }
 0x73e   :  { %v765_v44 = vmul.f32 %v763_v43, %v763_v43 }
 0x73f   :  { %872 = vmatpush.msra.mxu2 %v841_v28 }
 0x740   :  { %v767_v5 = vsel %vm62_vm0, %v765_v44, 0.0 }
 0x741   :  { %768 = vadd.xlane.f32.xlu2 %v767_v5  ;;  %v753_v45 = vpop.xlane.xlu0 %752 }
 0x742   :  { %v762_v46 = vmul.f32 %v1322_v4, %v753_v45 }
 0x744   :  { %v764_v47 = vsub.f32 %v747_v33, %v762_v46 }
 0x746   :  { %v766_v48 = vmul.f32 %v764_v47, %v764_v47 }
 0x748   :  { %v770_v49 = vsel %vm62_vm0, %v766_v48, 0.0 }
 0x749   :  { %771 = vadd.xlane.f32.xlu1 %v770_v49 }
 0x7b4   :  { %v769_v54 = vpop.xlane.xlu2 %768 }
 0x7b5   :  { %v773_v55 = vmul.f32 %v769_v54, %v1322_v4 }
 0x7b7   :  { %v775_v56 = vadd.f32 1e-05, %v773_v55 }
 0x7b9   :  { %1043 = vrsqrt.f32 %v775_v56  ;;  %vm783_vm4 = vweird.f32 %v775_v56 }
 0x7bc   :  { %v772_v60 = vpop.xlane.xlu1 %771 }
 0x7bd   :  { %v774_v61 = vmul.f32 %v772_v60, %v1322_v4 }
 0x7bf   :  { %v1044_v63 = vpop.eup %1043  ;;  %v776_v0 = vadd.f32 1e-05, %v774_v61 }
 0x7c0   :  { %v778_v2 = vmul.f32 %v1044_v63, %v775_v56  ;;  %vm784_vm3 = vweird.f32 %v1044_v63 }
 0x7c1   :  { %1045 = vrsqrt.f32 %v776_v0  ;;  %vm785_vm5 = vmor %vm783_vm4, %vm784_vm3  ;;  %vm793_vm7 = vweird.f32 %v776_v0 }
 0x7c2   :  { %v779_v3 = vmul.f32 %v1044_v63, %v778_v2 }
 0x7c4   :  { %v780_v7 = vmul.f32 0.5, %v779_v3 }
 0x7c6   :  { %v781_v8 = vsub.f32 1.5, %v780_v7  ;;  %v926_v7 = vperm.slane %v1210_v6, 6 }
 0x7c7   :  { %v1046_v10 = vpop.eup %1045 }
 0x7c8   :  { %v782_v12 = vmul.f32 %v1044_v63, %v781_v8  ;;  %v788_v13 = vmul.f32 %v1046_v10, %v776_v0  ;;  %vm794_vm6 = vweird.f32 %v1046_v10 }
 0x7c9   :  { %vm795_vm8 = vmor %vm793_vm7, %vm794_vm6 }
 0x7ca   :  { %v786_v9 = vsel %vm785_vm5, %v1044_v63, %v782_v12  ;;  %v789_v11 = vmul.f32 %v1046_v10, %v788_v13 }
 0x7cb   :  { %v797_v15 = vmul.f32 %v786_v9, %v763_v43 }
 0x7cc   :  { %v790_v17 = vmul.f32 0.5, %v789_v11 }
 0x7cd   :  { %v800_v18 = vmul.f32 %v799_v14, %v797_v15 }
 0x7ce   :  { %v791_v19 = vsub.f32 1.5, %v790_v17 }
 0x7cf   :  { %v803_v20 = vadd.f32 %v802_v16, %v800_v18 }
 0x7d0   :  { %v792_v21 = vmul.f32 %v1046_v10, %v791_v19 }
 0x7d1   :  { %988 = vmatmul.msk.f32.vlgmr.msrb.gmra.mxu1 %vm62_vm0, %v803_v20 }
 0x7d2   :  { %v796_v22 = vsel %vm795_vm8, %v1046_v10, %v792_v21 }
 0x7d3   :  { %v798_v23 = vmul.f32 %v796_v22, %v764_v47 }
 0x7d5   :  { %v801_v24 = vmul.f32 %v799_v14, %v798_v23 }
 0x7d7   :  { %v804_v25 = vadd.f32 %v802_v16, %v801_v24 }
 0x7d9   :  { %989 = vmatmul.msk.f32.gmra.mxu1 %vm62_vm0, %v804_v25 }
 0x84e   :  { %v833_v30 = vpop.f32.mrf.mxu1 }
 0x84f   :  { %v834_v31 = vadd.f32 %v833_v30, %v809_v29 }
 0x851   :  { %v839_v32 = vmax.f32 %v834_v31, 0.0 }
 0x853   :  { %990 = vmatmul.msk.f32.vlgmr.msra.gmra.mxu2 %vm850_vm9, %v839_v32 }
 0x856   :  { %v836_v33 = vpop.f32.mrf.mxu1 }
 0x857   :  { %v837_v34 = vadd.f32 %v836_v33, %v809_v29 }
 0x859   :  { %v840_v35 = vmax.f32 %v837_v34, 0.0 }
 0x85b   :  { %991 = vmatmul.msk.f32.gmra.mxu2 %vm850_vm9, %v840_v35 }
 0x8d6   :  { %v874_v37 = vpop.f32.mrf.mxu2 }
 0x8d7   :  { %v875_v38 = vadd.f32 %v874_v37, %v849_v36 }
 0x8d9   :  { %v880_v39 = vadd.f32 %v875_v38, %v803_v20 }
 0x8db   :  { %v882_v40 = vsel %vm62_vm0, %v880_v39, 0.0 }
 0x8dc   :  { %883 = vadd.xlane.f32.xlu0 %v882_v40 }
 0x8de   :  { %v877_v41 = vpop.f32.mrf.mxu2 }
 0x8df   :  { %v878_v42 = vadd.f32 %v877_v41, %v849_v36 }
 0x8e1   :  { %v881_v43 = vadd.f32 %v878_v42, %v804_v25 }
 0x8e3   :  { %v885_v44 = vsel %vm62_vm0, %v881_v43, 0.0 }
 0x8e4   :  { %886 = vadd.xlane.f32.xlu1 %v885_v44 }
 0x94f   :  { %v884_v5 = vpop.xlane.xlu0 %883 }
 0x950   :  { %v888_v45 = vmul.f32 %v884_v5, %v1322_v4 }
 0x952   :  { %v890_v46 = vsub.f32 %v880_v39, %v888_v45 }
 0x954   :  { %v892_v47 = vmul.f32 %v890_v46, %v890_v46 }
 0x956   :  { %v894_v48 = vsel %vm62_vm0, %v892_v47, 0.0 }
 0x957   :  { %v887_v49 = vpop.xlane.xlu1 %886  ;;  %895 = vadd.xlane.f32.xlu0 %v894_v48 }
 0x958   :  { %v889_v50 = vmul.f32 %v887_v49, %v1322_v4 }
 0x95a   :  { %v891_v51 = vsub.f32 %v881_v43, %v889_v50 }
 0x95c   :  { %v893_v52 = vmul.f32 %v891_v51, %v891_v51 }
 0x95e   :  { %v897_v53 = vsel %vm62_vm0, %v893_v52, 0.0 }
 0x95f   :  { %898 = vadd.xlane.f32.xlu2 %v897_v53 }
 0x9ca   :  { %v896_v54 = vpop.xlane.xlu0 %895 }
 0x9cb   :  { %v900_v55 = vmul.f32 %v896_v54, %v1322_v4 }
 0x9cd   :  { %v902_v56 = vadd.f32 1e-05, %v900_v55 }
 0x9cf   :  { %1047 = vrsqrt.f32 %v902_v56  ;;  %vm910_vm11 = vweird.f32 %v902_v56 }
 0x9d2   :  { %v899_v57 = vpop.xlane.xlu2 %898 }
 0x9d3   :  { %v901_v58 = vmul.f32 %v899_v57, %v1322_v4  ;;  %v929_v4 = vperm.slane %v1210_v6, 7 }
 0x9d5   :  { %v1048_v59 = vpop.eup %1047  ;;  %v903_v60 = vadd.f32 1e-05, %v901_v58 }
 0x9d6   :  { %v905_v61 = vmul.f32 %v1048_v59, %v902_v56  ;;  %vm911_vm10 = vweird.f32 %v1048_v59 }
 0x9d7   :  { %1049 = vrsqrt.f32 %v903_v60  ;;  %vm912_vm12 = vmor %vm910_vm11, %vm911_vm10  ;;  %vm920_vm14 = vweird.f32 %v903_v60 }
 0x9d8   :  { %v906_v62 = vmul.f32 %v1048_v59, %v905_v61 }
 0x9da   :  { %v907_v63 = vmul.f32 0.5, %v906_v62 }
 0x9dc   :  { %v908_v0 = vsub.f32 1.5, %v907_v63 }
 0x9dd   :  { %v1050_v1 = vpop.eup %1049 }
 0x9de   :  { %v909_v2 = vmul.f32 %v1048_v59, %v908_v0  ;;  %v915_v3 = vmul.f32 %v1050_v1, %v903_v60  ;;  %vm921_vm13 = vweird.f32 %v1050_v1 }
 0x9df   :  { %vm922_vm15 = vmor %vm920_vm14, %vm921_vm13 }
 0x9e0   :  { %v913_v8 = vsel %vm912_vm12, %v1048_v59, %v909_v2  ;;  %v916_v10 = vmul.f32 %v1050_v1, %v915_v3 }
 0x9e1   :  { %v924_v12 = vmul.f32 %v913_v8, %v890_v46 }
 0x9e2   :  { %v917_v13 = vmul.f32 0.5, %v916_v10 }
 0x9e3   :  { %v927_v14 = vmul.f32 %v926_v7, %v924_v12 }
 0x9e4   :  { %v918_v9 = vsub.f32 1.5, %v917_v13 }
 0x9e5   :  { %v930_v11 = vadd.f32 %v929_v4, %v927_v14 }
 0x9e6   :  { %v919_v15 = vmul.f32 %v1050_v1, %v918_v9 }
 0x9e7   :  { %932 = vst.msk [vmem:[#allocation7] sm:$0xff] %vm62_vm0, %v930_v11 }
 0x9e8   :  { %v923_v16 = vsel %vm922_vm15, %v1050_v1, %v919_v15 }
 0x9e9   :  { %v925_v17 = vmul.f32 %v923_v16, %v891_v51 }
 0x9eb   :  { %v928_v18 = vmul.f32 %v926_v7, %v925_v17 }
 0x9ed   :  { %v931_v6 = vadd.f32 %v929_v4, %v928_v18 }
 0x9ef   :  { %933 = vst.msk [vmem:[#allocation7 + $0x8] sm:$0xff] %vm62_vm0, %v931_v6 }
 0x9f0   :  { %946 = dma.vmem_to_hbm [thread:$0]  %s939_s8, 256, %s941_s2, [#allocation4], %s1130_s29, %s1130_s29, %s1131_s30  }
 0x9f1   :  { %1127 = dma.done.wait [#allocation4], 256  }
 0x9f2   :  { %1128 = vsyncadd [#allocation4], 4294967040 }
 0x9f3   :  { %951 = vsyncpa [#allocation3], 1 }
 0x9f4   :  { %952 = vsyncpa [#allocation6], 1 }
 0x9f5   :  { %953 = vsyncpa [#allocation4], 1 }

</bundles_post_ra>
